<compile_context>
chip_gen: v5e
topology: v5e:2x2
jax: 0.10.0
libtpu: 0.0.40
codegen_flags: <defaults>
</compile_context>

<pallas_src>
import math
import functools

import jax
import jax.numpy as jnp
from jax import lax
from jax.experimental import pallas as pl
from jax.experimental.pallas import tpu as pltpu


def _round_up(a: int, b: int) -> int:
    return (a + b - 1) // b * b


def _pick_tn(out_features: int) -> int:
    # Lane-dense, multiple of 128 (v5e) / 256 (v6e, v7x MXU) where possible.
    return 1024 if out_features >= 1024 else _round_up(out_features, 128)


def _pick_tm(batch: int) -> int:
    return 512 if batch >= 512 else _round_up(batch, 8)


def _arc_margin_kernel(label_ref, x_ref, xrn_ref, wt_ref, wrn_ref, o_ref, *,
                       s, cos_m, sin_m, th, mm, easy_margin, c1, c2):
    j = pl.program_id(0)                       # out-feature tile index (outer axis)
    tn = o_ref.shape[-1]

    # Raw matmul on the MXU in bf16 with f32 accumulation; normalize afterwards
    # with the precomputed reciprocal norms (O(TM*TN) instead of O(TN*K)).
    raw = jnp.dot(x_ref[...], wt_ref[...],
                  preferred_element_type=jnp.float32)                   # (TM, TN)
    cosine = raw * xrn_ref[...] * wrn_ref[...]  # (TM,TN)*(TM,1)*(1,TN), all f32

    # max(., 0) avoids NaN from fp rounding when cosine ~ +/-1 (1-cos^2 <= 1 always).
    sine = jnp.sqrt(jnp.maximum(1.0 - cosine * cosine, 0.0))
    phi = cosine * cos_m - sine * sin_m
    if easy_margin:
        phi = jnp.where(cosine > 0.0, phi, cosine)
    else:
        phi = jnp.where(cosine > th, phi, cosine - mm)

    # one_hot.scatter_(1, label, 1): compare the LOCAL iota against label - j*tn
    # (cheaper than offsetting the full (TM,TN) iota by a scalar add per tile).
    col_ids = lax.broadcasted_iota(jnp.int32, cosine.shape, 1)
    is_label = col_ids == (label_ref[...] - j * tn)                     # (TM, TN)

    # out = s*[oh_sm*phi + (1-oh_sm)*cos]  with oh_sm = (1-ls_eps)*oh + ls_eps/out
    #     = s*cos + diff * (c2 + onehot*c1),  diff = phi - cos
    diff = phi - cosine
    out = s * cosine + diff * jnp.where(is_label, c1 + c2, c2)
    o_ref[...] = out.astype(o_ref.dtype)


def prepare_arc_margin_weight(weight):
    """One-time (parameter-init / cached) weight preparation.

    Returns:
      wt  : (k_pad, out_pad) bf16, W pre-transposed so out_features is on lanes.
      wrn : (1, out_pad) f32, reciprocal L2 norms of W rows (computed in f32).
    """
    out_features, K = weight.shape
    tn = _pick_tn(out_features)
    k_pad = _round_up(K, 128)
    out_pad = _round_up(out_features, tn)

    wf = weight.astype(jnp.float32)
    w_rnorm = 1.0 / jnp.maximum(jnp.sqrt(jnp.sum(wf * wf, axis=1)), 1e-12)

    wt = jnp.zeros((k_pad, out_pad), jnp.bfloat16)
    wt = wt.at[:K, :out_features].set(weight.astype(jnp.bfloat16).T)
    wrn = jnp.zeros((1, out_pad), jnp.float32).at[0, :out_features].set(w_rnorm)
    return wt, wrn


def arc_margin_product_forward(x, label, wt, wrn, out_features, *,
                               s, m, easy_margin, ls_eps):
    """JAX/Pallas equivalent of ArcMarginProduct.forward (returns float32).

    `wt`, `wrn` come from prepare_arc_margin_weight(weight) (hoisted setup).
    """
    B, K = x.shape
    k_pad, out_pad = wt.shape
    assert k_pad == _round_up(K, 128)

    tn = _pick_tn(out_features)
    tm = _pick_tm(B)
    assert out_pad % tn == 0
    b_pad = _round_up(B, tm)

    # Precompute 1/max(||x_row||, 1e-12) in f32 once, outside the kernel.
    xf = x.astype(jnp.float32)
    x_rnorm = lax.rsqrt(
        jnp.maximum(jnp.sum(xf * xf, axis=-1, keepdims=True), 1e-24))   # (B, 1)

    # Stream x as bf16 (halves the recurring x HBM traffic); pad only if needed.
    x_bf16 = x.astype(jnp.bfloat16)
    if b_pad == B and k_pad == K:
        xp = x_bf16
        xrn = x_rnorm
        lab = label.reshape(-1, 1).astype(jnp.int32)
    else:
        xp = jnp.zeros((b_pad, k_pad), jnp.bfloat16).at[:B, :K].set(x_bf16)
        xrn = jnp.zeros((b_pad, 1), jnp.float32).at[:B, :].set(x_rnorm)
        lab = jnp.full((b_pad, 1), -1, jnp.int32)
        lab = lab.at[:B, 0].set(label.reshape(-1).astype(jnp.int32))

    kernel = functools.partial(
        _arc_margin_kernel,
        s=float(s),
        cos_m=math.cos(m), sin_m=math.sin(m),
        th=math.cos(math.pi - m), mm=math.sin(math.pi - m) * m,
        easy_margin=bool(easy_margin),
        c1=float(s) * (1.0 - float(ls_eps)),
        c2=float(s) * float(ls_eps) / out_features,
    )

    grid = (out_pad // tn, b_pad // tm)   # out tiles OUTER, batch tiles INNER

    out_padded = pl.pallas_call(
        kernel,
        out_shape=jax.ShapeDtypeStruct((b_pad, out_pad), jnp.float32),
        grid_spec=pltpu.PrefetchScalarGridSpec(
            num_scalar_prefetch=0,
            grid=grid,
            in_specs=[
                pl.BlockSpec((tm, 1), lambda j, i: (i, 0)),        # label
                pl.BlockSpec((tm, k_pad), lambda j, i: (i, 0)),    # x (bf16)
                pl.BlockSpec((tm, 1), lambda j, i: (i, 0)),        # 1/||x_row||
                pl.BlockSpec((k_pad, tn), lambda j, i: (0, j)),    # W^T (reused over batch)
                pl.BlockSpec((1, tn), lambda j, i: (0, j)),        # 1/||w_row||
            ],
            out_specs=pl.BlockSpec((tm, tn), lambda j, i: (i, j)),
        ),
        compiler_params=pltpu.CompilerParams(
            # Shard only the out-feature axis across v7x megacore so the two
            # cores never duplicate the dominant W stream.
            dimension_semantics=("parallel", "arbitrary"),
            vmem_limit_bytes=48 * 1024 * 1024),
    )(lab, xp, xrn, wt, wrn)

    if b_pad != B or out_pad != out_features:
        return out_padded[:B, :out_features]
    return out_padded


def _reference(x, weight, label, *, s, m, easy_margin, ls_eps):
    """Pure-JAX f32 reference mirroring the PyTorch module."""
    xf = x.astype(jnp.float32)
    wf = weight.astype(jnp.float32)
    xn = xf / jnp.maximum(jnp.linalg.norm(xf, axis=1, keepdims=True), 1e-12)
    wn = wf / jnp.maximum(jnp.linalg.norm(wf, axis=1, keepdims=True), 1e-12)
    cosine = xn @ wn.T
    sine = jnp.sqrt(jnp.clip(1.0 - cosine ** 2, 0.0, 1.0))
    phi = cosine * math.cos(m) - sine * math.sin(m)
    if easy_margin:
        phi = jnp.where(cosine > 0.0, phi, cosine)
    else:
        phi = jnp.where(cosine > math.cos(math.pi - m), phi,
                        cosine - math.sin(math.pi - m) * m)
    one_hot = jax.nn.one_hot(label, weight.shape[0], dtype=jnp.float32)
    if ls_eps > 0:
        one_hot = (1 - ls_eps) * one_hot + ls_eps / weight.shape[0]
    return s * (one_hot * phi + (1.0 - one_hot) * cosine)


if __name__ == "__main__":
    # Small shapes consistent with the module's forward.
    B = 8
    in_features = 32
    out_features = 16
    s_param = 30.0
    m_param = 0.5
    easy_margin = False
    ls_eps = 0.1

    key = jax.random.PRNGKey(0)
    kx, kw, kl = jax.random.split(key, 3)

    x = jax.random.normal(kx, (B, in_features), dtype=jnp.float32)

    # Deterministic Xavier-uniform init for weight (out_features, in_features).
    bound = math.sqrt(6.0 / (in_features + out_features))
    weight = jax.random.uniform(
        kw, (out_features, in_features), dtype=jnp.float32,
        minval=-bound, maxval=bound)

    label = jax.random.randint(kl, (B,), 0, out_features, dtype=jnp.int32)

    # One-time weight prep (hoisted out of the forward path).
    wt, wrn = prepare_arc_margin_weight(weight)

    out = arc_margin_product_forward(
        x, label, wt, wrn, out_features,
        s=s_param, m=m_param, easy_margin=easy_margin, ls_eps=ls_eps)
    out = jax.block_until_ready(out)

    assert out.shape == (B, out_features)
    assert out.dtype == jnp.float32
    assert bool(jnp.all(jnp.isfinite(out)))

    ref = _reference(x, weight, label, s=s_param, m=m_param,
                     easy_margin=easy_margin, ls_eps=ls_eps)
    max_err = float(jnp.max(jnp.abs(out - ref)))
    # bf16 MXU feed with f32 accumulation; outputs are O(±s)=O(±30).
    assert max_err < 1.0, f"max abs error vs reference too large: {max_err}"

    print("KERNEL_OK")
</pallas_src>

<mosaic_0001>
module attributes {stable_mosaic.version = 11 : i64} {
  func.func @_arc_margin_kernel(%arg0: i32, %arg1: i32, %arg2: memref<8x1xi32, #tpu.memory_space<vmem>>, %arg3: memref<8x128xbf16, #tpu.memory_space<vmem>>, %arg4: memref<8x1xf32, #tpu.memory_space<vmem>>, %arg5: memref<128x128xbf16, #tpu.memory_space<vmem>>, %arg6: memref<1x128xf32, #tpu.memory_space<vmem>>, %arg7: memref<8x128xf32, #tpu.memory_space<vmem>>) attributes {dimension_semantics = [#tpu.dimension_semantics<parallel>, #tpu.dimension_semantics<arbitrary>], iteration_bounds = array<i64: 1, 1>, scalar_prefetch = 0 : i64, scratch_operands = 0 : i64, tpu.core_type = #tpu.core_type<tc>, window_params = [{transform_indices = @transform_0, window_bounds = array<i64: 8, 1>}, {transform_indices = @transform_1, window_bounds = array<i64: 8, 128>}, {transform_indices = @transform_2, window_bounds = array<i64: 8, 1>}, {transform_indices = @transform_3, window_bounds = array<i64: 128, 128>}, {transform_indices = @transform_4, window_bounds = array<i64: 1, 128>}, {transform_indices = @transform_5, window_bounds = array<i64: 8, 128>}]} {
    %c0 = arith.constant 0 : index
    %c0_0 = arith.constant 0 : index
    %0 = vector.load %arg3[%c0, %c0_0] : memref<8x128xbf16, #tpu.memory_space<vmem>>, vector<8x128xbf16>
    %c0_1 = arith.constant 0 : index
    %c0_2 = arith.constant 0 : index
    %1 = vector.load %arg5[%c0_1, %c0_2] : memref<128x128xbf16, #tpu.memory_space<vmem>>, vector<128x128xbf16>
    %cst = arith.constant dense<0.000000e+00> : vector<8x128xf32>
    %2 = tpu.matmul %0, %1, %cst {dimension_numbers = #tpu.dot_dimension_numbers<[1], [0], [0], [1], [0, 0, 1, 1], [], []>} : vector<8x128xbf16>, vector<128x128xbf16>, vector<8x128xf32> -> vector<8x128xf32>
    %c0_3 = arith.constant 0 : index
    %c0_4 = arith.constant 0 : index
    %3 = vector.load %arg4[%c0_3, %c0_4] : memref<8x1xf32, #tpu.memory_space<vmem>>, vector<8x1xf32>
    %4 = vector.broadcast %3 : vector<8x1xf32> to vector<8x128xf32>
    %5 = arith.mulf %2, %4 : vector<8x128xf32>
    %c0_5 = arith.constant 0 : index
    %c0_6 = arith.constant 0 : index
    %6 = vector.load %arg6[%c0_5, %c0_6] : memref<1x128xf32, #tpu.memory_space<vmem>>, vector<1x128xf32>
    %7 = vector.broadcast %6 : vector<1x128xf32> to vector<8x128xf32>
    %8 = arith.mulf %5, %7 : vector<8x128xf32>
    %9 = arith.mulf %8, %8 : vector<8x128xf32>
    %cst_7 = arith.constant 1.000000e+00 : f32
    %10 = vector.broadcast %cst_7 : f32 to vector<8x128xf32>
    %11 = arith.subf %10, %9 : vector<8x128xf32>
    %cst_8 = arith.constant 0.000000e+00 : f32
    %12 = vector.broadcast %cst_8 : f32 to vector<8x128xf32>
    %13 = arith.maximumf %11, %12 : vector<8x128xf32>
    %14 = math.sqrt %13 : vector<8x128xf32>
    %cst_9 = arith.constant 0.87758255 : f32
    %15 = vector.broadcast %cst_9 : f32 to vector<8x128xf32>
    %16 = arith.mulf %8, %15 : vector<8x128xf32>
    %cst_10 = arith.constant 0.47942555 : f32
    %17 = vector.broadcast %cst_10 : f32 to vector<8x128xf32>
    %18 = arith.mulf %14, %17 : vector<8x128xf32>
    %19 = arith.subf %16, %18 : vector<8x128xf32>
    %cst_11 = arith.constant -0.87758255 : f32
    %20 = vector.broadcast %cst_11 : f32 to vector<8x128xf32>
    %21 = arith.cmpf ogt, %8, %20 : vector<8x128xf32>
    %cst_12 = arith.constant 0.239712775 : f32
    %22 = vector.broadcast %cst_12 : f32 to vector<8x128xf32>
    %23 = arith.subf %8, %22 : vector<8x128xf32>
    %24 = arith.select %21, %19, %23 : vector<8x128xi1>, vector<8x128xf32>
    %25 = tpu.iota {dimensions = array<i32: 1>} : vector<8x128xi32>
    %c0_13 = arith.constant 0 : index
    %c0_14 = arith.constant 0 : index
    %26 = vector.load %arg2[%c0_13, %c0_14] : memref<8x1xi32, #tpu.memory_space<vmem>>, vector<8x1xi32>
    %c128_i32 = arith.constant 128 : i32
    %27 = arith.muli %arg0, %c128_i32 : i32
    %28 = vector.broadcast %27 : i32 to vector<8x1xi32>
    %29 = arith.subi %26, %28 : vector<8x1xi32>
    %30 = vector.broadcast %29 : vector<8x1xi32> to vector<8x128xi32>
    %31 = arith.cmpi eq, %25, %30 : vector<8x128xi32>
    %32 = arith.subf %24, %8 : vector<8x128xf32>
    %cst_15 = arith.constant 3.000000e+01 : f32
    %33 = vector.broadcast %cst_15 : f32 to vector<8x128xf32>
    %34 = arith.mulf %33, %8 : vector<8x128xf32>
    %cst_16 = arith.constant 2.718750e+01 : f32
    %cst_17 = arith.constant 1.875000e-01 : f32
    %35 = vector.broadcast %cst_16 : f32 to vector<8x128xf32>
    %36 = vector.broadcast %cst_17 : f32 to vector<8x128xf32>
    %37 = arith.select %31, %35, %36 : vector<8x128xi1>, vector<8x128xf32>
    %38 = arith.mulf %32, %37 : vector<8x128xf32>
    %39 = arith.addf %34, %38 : vector<8x128xf32>
    %c0_18 = arith.constant 0 : index
    %c0_19 = arith.constant 0 : index
    %40 = vector.load %arg7[%c0_18, %c0_19] : memref<8x128xf32, #tpu.memory_space<vmem>>, vector<8x128xf32>
    tpu.vector_store %arg7[%c0_18, %c0_19], %39 {strides = array<i32>} : memref<8x128xf32, #tpu.memory_space<vmem>>, vector<8x128xf32>,
    return
  }
  func.func @transform_0(%arg0: i32, %arg1: i32) -> (i32, i32) {
    %c0_i32 = arith.constant 0 : i32
    %c0_i32_0 = arith.constant 0 : i32
    return %arg1, %c0_i32 : i32, i32
  }
  func.func @transform_1(%arg0: i32, %arg1: i32) -> (i32, i32) {
    %c0_i32 = arith.constant 0 : i32
    %c0_i32_0 = arith.constant 0 : i32
    return %arg1, %c0_i32 : i32, i32
  }
  func.func @transform_2(%arg0: i32, %arg1: i32) -> (i32, i32) {
    %c0_i32 = arith.constant 0 : i32
    %c0_i32_0 = arith.constant 0 : i32
    return %arg1, %c0_i32 : i32, i32
  }
  func.func @transform_3(%arg0: i32, %arg1: i32) -> (i32, i32) {
    %c0_i32 = arith.constant 0 : i32
    %c0_i32_0 = arith.constant 0 : i32
    return %c0_i32, %arg0 : i32, i32
  }
  func.func @transform_4(%arg0: i32, %arg1: i32) -> (i32, i32) {
    %c0_i32 = arith.constant 0 : i32
    %c0_i32_0 = arith.constant 0 : i32
    return %c0_i32, %arg0 : i32, i32
  }
  func.func @transform_5(%arg0: i32, %arg1: i32) -> (i32, i32) {
    %c0_i32 = arith.constant 0 : i32
    return %arg1, %arg0 : i32, i32
  }
}

</mosaic_0001>

<bundles_post_ra>
// kernel: tpu_custom_call.1
= control target key start
LH: loop header
LB: loop body
LE: loop exit
PB: predicated region body
PF: predicated region fallthrough
CT: control target
= control target key end

     0   :  { %10 = vsyncpa [#allocation3], 0  ;;  %s338_s0 = inlined_call_operand.vmem [shape: s32[8,1], index: 0, kind: input, shape index: {}]   ;;  %s339_s1 = inlined_call_operand.vmem [shape: bf16[8,128], index: 1, kind: input, shape index: {}]   ;;  %s340_s2 = inlined_call_operand.vmem [shape: f32[8,1], index: 2, kind: input, shape index: {}]   ;;  %s341_s3 = inlined_call_operand.hbm [shape: bf16[128,128], index: 3, kind: input, shape index: {}]   ;;  %s342_s4 = inlined_call_operand.vmem [shape: f32[1,128], index: 4, kind: input, shape index: {}]   ;;  %s343_s5 = inlined_call_operand.hbm [shape: f32[8,128], index: 5, kind: output, shape index: {}]  }
   0x1   :  { %11 = vsyncpa [#allocation4], 0  ;;  %s22_s20 = sshll.u32 %s341_s3, 4  ;;  %s284_s21 = smov [#allocation2]   ;;  %s23_s20 = int_to_ptr.hbm [resolvable:$true] %s22_s20 }
   0x2   :  { %s24_s22 = sshll.u32 %s284_s21, 4  ;;  %s285_s23 = smov 64   ;;  %s25_s22 = int_to_ptr.vmem [resolvable:$true] %s24_s22 }
   0x3   :  { %s286_s24 = smov 4  }
   0x4   :  { %30 = dma.hbm_to_vmem [thread:$0]  %s23_s20, 1024, %s25_s22, [#allocation3], %s285_s23, %s285_s23, %s286_s24  }
   0x5   :  { %280 = dma.done.wait [#allocation3], 1024  }
   0x6   :  { %281 = vsyncadd [#allocation3], 4294966272  ;;  %v221_v0 = vld [vmem:[#allocation2 + $0x38] sm:$0xff]  ;;  %v220_v1 = vld [vmem:[#allocation2 + $0x30] sm:$0xff]  ;;  %v287_v2 = vmov 0   ;;  %v148_v27 = vlaneseq  ;;  %v288_v40 = vmov 0.1875  }
   0x7   :  { %102 = vmatpush.bf16.msra.mxu0 %v221_v0  ;;  %228 = vset.pattern.permute.xlu0 %v287_v2  ;;  %v115_v3 = vld [vmem:[%s340_s2] sm:$0xff]  ;;  %v219_v4 = vld [vmem:[#allocation2 + $0x28] sm:$0xff]  ;;  %v217_v7 = vld [vmem:[#allocation2 + $0x18] sm:$0xff]  ;;  %s171_s7 = sshll.u32 %s343_s5, 4  ;;  %s172_s7 = int_to_ptr.hbm [resolvable:$true] %s171_s7 }
   0x8   :  { %118 = vperm.xlu0 %228, %v115_v3   ;;  %v150_v5 = vld [vmem:[%s338_s0] sm:$0xff]  ;;  %v216_v8 = vld [vmem:[#allocation2 + $0x10] sm:$0xff]  ;;  %v215_v9 = vld [vmem:[#allocation2 + $0x8] sm:$0xff]  ;;  %v149_v31 = vand.u32 127, %v148_v27  ;;  %s289_s0 = smov [#allocation5]  }
   0x9   :  { %v218_v6 = vld [vmem:[#allocation2 + $0x20] sm:$0xff] }
   0xa   :  { %v214_v10 = vld [vmem:[#allocation2] sm:$0xff] }
   0xb   :  { %103 = vmatpush.bf16.msra.mxu0 %v220_v1  ;;  %v37_v11 = vld [vmem:[%s339_s1] sm:$0xf]  ;;  %s169_s1 = sshll.u32 %s289_s0, 4  ;;  %s170_s1 = int_to_ptr.vmem [resolvable:$true] %s169_s1 }
   0xc   :  { %v229_v12 = vld [vmem:[%s342_s4] ss:$0 sm:$0xff] }
   0xf   :  { %104 = vmatpush.bf16.msra.mxu0 %v219_v4 }
  0x10   :  { %155 = vperm.xlu0 %228, %v150_v5  }
  0x13   :  { %105 = vmatpush.bf16.msra.mxu0 %v218_v6 }
  0x17   :  { %106 = vmatpush.bf16.msra.mxu0 %v217_v7 }
  0x1b   :  { %107 = vmatpush.bf16.msra.mxu0 %v216_v8 }
  0x1f   :  { %108 = vmatpush.bf16.msra.mxu0 %v215_v9 }
  0x23   :  { %109 = vmatpush.bf16.msra.mxu0 %v214_v10 }
  0x26   :  { %110 = vmatmul.bf16.vlgmr.msra.gmra.mxu0 %v37_v11 }
  0x7a   :  { %v119_v13 = vpop.permute.xlu0 %118 }
  0x82   :  { %v156_v33 = vpop.permute.xlu0 %155 }
  0x83   :  { %vm157_vm2 = vcmp.eq.s32.totalorder %v149_v31, %v156_v33 }
  0x84   :  { %v160_v41 = vsel %vm157_vm2, 27.1875, %v288_v40 }
  0xa3   :  { %v111_v14 = vpop.f32.mrf.mxu0 }
  0xa4   :  { %v121_v15 = vmul.f32 %v119_v13, %v111_v14 }
  0xa6   :  { %v126_v16 = vmul.f32 %v229_v12, %v121_v15 }
  0xa8   :  { %v127_v17 = vmul.f32 %v126_v16, %v126_v16  ;;  %v142_v34 = vmul.f32 0.87758255, %v126_v16  ;;  %v213_v37 = vadd.f32 -0.23971277, %v126_v16  ;;  %vm145_vm3 = vcmp.gt.f32.partialorder %v126_v16, -0.87758255 }
  0xa9   :  { %v159_v42 = vmul.f32 30.0, %v126_v16 }
  0xaa   :  { %v128_v18 = vsub.f32 1.0, %v127_v17 }
  0xab   :  { %v113_v19 = vpop.f32.mrf.mxu0 }
  0xac   :  { %v129_v20 = vmax.f32 %v128_v18, 0.0 }
  0xae   :  { %230 = vrsqrt.f32 %v129_v20  ;;  %vm137_vm0 = vcmp.eq.f32.partialorder %v129_v20, inf  ;;  %v140_v29 = vand.u32 2147483648, %v129_v20  ;;  %vm139_vm1 = vcmp.eq.f32.partialorder %v129_v20, 0.0 }
  0xb4   :  { %v231_v21 = vpop.eup %230 }
  0xb5   :  { %v131_v22 = vmul.f32 %v231_v21, %v129_v20 }
  0xb7   :  { %v132_v23 = vmul.f32 %v231_v21, %v131_v22 }
  0xb9   :  { %v133_v24 = vmul.f32 0.5, %v132_v23 }
  0xbb   :  { %v134_v25 = vsub.f32 1.5, %v133_v24 }
  0xbd   :  { %v135_v26 = vmul.f32 %v231_v21, %v134_v25 }
  0xbf   :  { %v136_v28 = vmul.f32 %v135_v26, %v129_v20 }
  0xc1   :  { %v138_v30 = vsel %vm137_vm0, %v129_v20, %v136_v28 }
  0xc2   :  { %v141_v32 = vsel %vm139_vm1, %v140_v29, %v138_v30 }
  0xc3   :  { %v143_v35 = vmul.f32 0.47942555, %v141_v32 }
  0xc5   :  { %v144_v36 = vsub.f32 %v142_v34, %v143_v35 }
  0xc7   :  { %v147_v38 = vsel %vm145_vm3, %v144_v36, %v213_v37 }
  0xc8   :  { %v158_v39 = vsub.f32 %v147_v38, %v126_v16 }
  0xca   :  { %v161_v43 = vmul.f32 %v160_v41, %v158_v39 }
  0xcc   :  { %v162_v44 = vadd.f32 %v161_v43, %v159_v42 }
  0xce   :  { %163 = vst [vmem:[#allocation5] sm:$0xff] %v162_v44 }
  0xcf   :  { %174 = dma.vmem_to_hbm [thread:$0]  %s170_s1, 128, %s172_s7, [#allocation4]  }
  0xd0   :  { %282 = dma.done.wait [#allocation4], 128  }
  0xd1   :  { %283 = vsyncadd [#allocation4], 4294967168 }
  0xd2   :  { %179 = vsyncpa [#allocation3], 1 }
  0xd3   :  { %180 = vsyncpa [#allocation4], 1 }

</bundles_post_ra>
